<compile_context>
chip_gen: v5e
topology: v5e:2x2
jax: 0.10.0
libtpu: 0.0.40
codegen_flags: <defaults>
</compile_context>

<pallas_src>
import functools

import jax
import jax.numpy as jnp
from jax.experimental import pallas as pl
from jax.experimental.pallas import tpu as pltpu

_LANE = 128            # TPU lane width: pad every feature axis to a multiple of this
_MAX_TILE_B = 512      # batch-tile ceiling (tiling sweeps show ~85% HBM roofline at 512)
_VMEM_BUDGET = 32 << 20  # conservative scoped-VMEM planning budget (v6e/v7x default)


def _round_up(n, m):
    return ((n + m - 1) // m) * m


def _const_block_spec(shape):
    """BlockSpec for a grid-invariant (VMEM-resident) operand.

    Constant index_map -> DMA'd once, stays resident across grid steps.
    pipeline_mode=Buffered(1) drops the default double buffer, halving the
    resident-weight VMEM footprint (matters most on v7x's 64 MiB per-TC VMEM
    and v5e's 16 MiB scoped default). Falls back cleanly on older JAX.
    """
    index_map = lambda i: (0, 0)
    if hasattr(pl, "Buffered"):
        try:
            return pl.BlockSpec(shape, index_map, pipeline_mode=pl.Buffered(1))
        except TypeError:
            pass
    return pl.BlockSpec(shape, index_map)


def _choose_tile_b(batch, latent_pad, out_feat_pad, resident_bytes):
    """Pick the batch tile.

    Goals: big tile to amortize the ~0.35us per-grid-step overhead; >=2 grid
    steps whenever the batch allows it so v7x's two TensorCores both get work
    (no-op on v5e/v6e); never pad a tiny batch up to a huge tile; keep the
    double-buffered x/out tiles + resident weights inside the VMEM budget.
    """
    padded = _round_up(max(batch, 1), 8)
    tile = min(_MAX_TILE_B, _round_up(-(-padded // 2), 8))   # >=2 steps when possible
    tile = min(tile, padded)
    row_bytes = (latent_pad + out_feat_pad) * 4              # f32 x-row + f32 out-row
    budget = max(int(0.75 * _VMEM_BUDGET) - resident_bytes, 2 * 8 * row_bytes)
    while tile > 8 and 2 * tile * row_bytes > budget:        # 2 = double-buffered I/O
        tile = max(8, _round_up(tile // 2, 8))
    return tile


def _make_generator_kernel(num_layers):
    """Fused MLP kernel.

    Kernel ref order: x_ref, w_0, b_0, w_1, b_1, ..., w_{n-1}, b_{n-1}, out_ref.
    Matmuls run on the MXU with bf16 operands and f32 accumulation; bias add
    and relu on the VPU, tanh on the EUP, all in f32.
    """

    def kernel(x_ref, *refs):
        out_ref = refs[-1]
        # x arrives in f32; cast to bf16 here (free VPU work under MXU slack)
        # instead of materializing a separate bf16 copy of x in HBM.
        h = x_ref[...].astype(jnp.bfloat16)                  # (TILE_B, in_pad)
        for i in range(num_layers):
            w = refs[2 * i][...]                             # bf16 (in_pad, out_pad), resident
            b = refs[2 * i + 1][...]                         # f32  (1, out_pad)
            acc = jnp.dot(h, w, preferred_element_type=jnp.float32) + b
            if i == num_layers - 1:
                out_ref[...] = jnp.tanh(acc).astype(out_ref.dtype)   # last layer: tanh
            else:
                h = jnp.maximum(acc, 0.0).astype(jnp.bfloat16)       # hidden: relu

    return kernel


@functools.partial(jax.jit, static_argnames=("output_color_count",))
def generator_forward(x, params, *, output_color_count):
    """Run the Generator forward pass.

    Args:
      x: (B, latent_size) float32.
      params: list of (W, b) with W shaped (in, out) and b shaped (1, out), float32.
      output_color_count: C, so the last layer has 3*C outputs.

    Returns:
      (B, 3, C) float32 — matches `x.view(-1, 3, output_color_count)` in torch.
    """
    num_layers = len(params)
    batch, latent = x.shape
    out_features = params[-1][0].shape[1]
    assert out_features == 3 * output_color_count

    latent_pad = _round_up(latent, _LANE)
    out_feat_pad = _round_up(out_features, _LANE)

    # ---- pad + bf16-cast weights (tiny vs. activations); build their specs ----
    flat_params, weight_specs = [], []
    resident_bytes = 0
    max_out_pad = 0
    for w, b in params:
        in_f, out_f = w.shape
        in_pad = _round_up(in_f, _LANE)
        out_pad = _round_up(out_f, _LANE)
        max_out_pad = max(max_out_pad, out_pad)
        w_p = jnp.pad(w, ((0, in_pad - in_f), (0, out_pad - out_f))).astype(jnp.bfloat16)
        b_p = jnp.pad(b, ((0, 0), (0, out_pad - out_f))).astype(jnp.float32)
        flat_params += [w_p, b_p]
        weight_specs.append(_const_block_spec((in_pad, out_pad)))
        weight_specs.append(_const_block_spec((1, out_pad)))
        resident_bytes += in_pad * out_pad * 2 + out_pad * 4

    # ---- batch tile / grid ----
    tile_b = _choose_tile_b(batch, latent_pad, out_feat_pad, resident_bytes)
    padded_b = _round_up(batch, tile_b)

    # x stays f32: pad batch + lane dims only; bf16 cast happens in-kernel.
    x_p = jnp.pad(x, ((0, padded_b - batch), (0, latent_pad - latent)))
    in_specs = [pl.BlockSpec((tile_b, latent_pad), lambda i: (i, 0))] + weight_specs

    # ---- explicit VMEM budget: resident weights (1 buffer each) +
    # double-buffered x/out tiles + activation / compiler-scratch headroom ----
    io_bytes = 2 * tile_b * (latent_pad + out_feat_pad) * 4
    act_bytes = 2 * tile_b * max_out_pad * 4
    vmem_limit = int(1.5 * (resident_bytes + io_bytes + act_bytes)) + (4 << 20)
    vmem_limit = min(max(vmem_limit, 32 << 20), 96 << 20)
    # TODO(synk): if resident padded weights ever exceed per-TC VMEM (64 MiB on
    # v7x), switch to K/N-tiled weight streaming with an "arbitrary" reduction
    # grid axis + f32 accumulator scratch instead of the resident-weight design.

    out = pl.pallas_call(
        _make_generator_kernel(num_layers),
        out_shape=jax.ShapeDtypeStruct((padded_b, out_feat_pad), jnp.float32),
        grid=(padded_b // tile_b,),
        in_specs=in_specs,
        out_specs=pl.BlockSpec((tile_b, out_feat_pad), lambda i: (i, 0)),
        compiler_params=pltpu.CompilerParams(
            # Batch steps are independent -> megacore sharding on v7x (2 TCs).
            dimension_semantics=("parallel",),
            vmem_limit_bytes=vmem_limit,
        ),
    )(x_p, *flat_params)

    # Un-pad + reshape stay inside this jit (fused into the same dispatch); the
    # kernel itself keeps the lane-dense padded output (unmasked stores).
    # Matches torch's `x.view(-1, 3, output_color_count)`.
    return out[:batch, :out_features].reshape(-1, 3, output_color_count)


def init_generator_params(key, latent_size, layer_sizes, output_color_count):
    """Deterministic parameter init matching the torch module's layer shapes."""
    input_sizes = [latent_size] + list(layer_sizes)
    output_sizes = list(layer_sizes) + [output_color_count * 3]
    params = []
    for in_f, out_f in zip(input_sizes, output_sizes):
        key, kw, kb = jax.random.split(key, 3)
        bound = 1.0 / jnp.sqrt(jnp.float32(in_f))
        w = jax.random.uniform(kw, (in_f, out_f), jnp.float32, -bound, bound)
        b = jax.random.uniform(kb, (1, out_f), jnp.float32, -bound, bound)
        params.append((w, b))
    return params


def _ref_f32(x, params, output_color_count):
    h = x
    for i, (w, b) in enumerate(params):
        h = h @ w + b
        h = jnp.tanh(h) if i == len(params) - 1 else jnp.maximum(h, 0.0)
    return h.reshape(-1, 3, output_color_count)


if __name__ == "__main__":
    # Small, module-consistent shapes.
    latent_size = 32
    layer_sizes = [64, 48]
    output_color_count = 16   # final layer outputs 3 * 16 = 48 features
    batch = 2

    key = jax.random.PRNGKey(0)
    key, kx = jax.random.split(key)
    x = jax.random.normal(kx, (batch, latent_size), jnp.float32)
    params = init_generator_params(key, latent_size, layer_sizes, output_color_count)

    y = generator_forward(x, params, output_color_count=output_color_count)
    jax.block_until_ready(y)

    # Reference 1: same bf16-operand / f32-accumulate numerics in plain JAX.
    h = x
    for i, (w, b) in enumerate(params):
        acc = jnp.dot(h.astype(jnp.bfloat16), w.astype(jnp.bfloat16),
                      preferred_element_type=jnp.float32) + b
        h = jnp.tanh(acc) if i == len(params) - 1 else jnp.maximum(acc, 0.0)
    ref_bf16 = h.reshape(-1, 3, output_color_count)

    # Reference 2: pure f32 math (the torch module's exact numerics).
    ref_f32 = _ref_f32(x, params, output_color_count)

    assert y.shape == (batch, 3, output_color_count), y.shape
    assert jnp.allclose(y, ref_bf16, atol=2e-3, rtol=2e-3), "mismatch vs bf16 reference"
    assert jnp.allclose(y, ref_f32, atol=5e-2, rtol=5e-2), "mismatch vs f32 reference"

    # Second config: non-multiple-of-tile batch to exercise the multi-step
    # (2-core-shardable) grid path and the batch-padding logic.
    batch2 = 300
    key, kx2 = jax.random.split(key)
    x2 = jax.random.normal(kx2, (batch2, latent_size), jnp.float32)
    y2 = generator_forward(x2, params, output_color_count=output_color_count)
    jax.block_until_ready(y2)
    ref2 = _ref_f32(x2, params, output_color_count)
    assert y2.shape == (batch2, 3, output_color_count), y2.shape
    assert jnp.allclose(y2, ref2, atol=5e-2, rtol=5e-2), "mismatch vs f32 reference (large batch)"

    print("KERNEL_OK")
</pallas_src>

<mosaic_0001>
module attributes {stable_mosaic.version = 11 : i64} {
  func.func @kernel(%arg0: i32, %arg1: memref<8x128xf32, #tpu.memory_space<vmem>>, %arg2: memref<128x128xbf16, #tpu.memory_space<vmem>>, %arg3: memref<1x128xf32, #tpu.memory_space<vmem>>, %arg4: memref<128x128xbf16, #tpu.memory_space<vmem>>, %arg5: memref<1x128xf32, #tpu.memory_space<vmem>>, %arg6: memref<128x128xbf16, #tpu.memory_space<vmem>>, %arg7: memref<1x128xf32, #tpu.memory_space<vmem>>, %arg8: memref<8x128xf32, #tpu.memory_space<vmem>>) attributes {dimension_semantics = [#tpu.dimension_semantics<parallel>], iteration_bounds = array<i64: 1>, scalar_prefetch = 0 : i64, scratch_operands = 0 : i64, tpu.core_type = #tpu.core_type<tc>, window_params = [{transform_indices = @transform_0, window_bounds = array<i64: 8, 128>}, {pipeline_mode = #tpu.pipeline_mode<synchronous>, transform_indices = @transform_1, window_bounds = array<i64: 128, 128>}, {pipeline_mode = #tpu.pipeline_mode<synchronous>, transform_indices = @transform_2, window_bounds = array<i64: 1, 128>}, {pipeline_mode = #tpu.pipeline_mode<synchronous>, transform_indices = @transform_3, window_bounds = array<i64: 128, 128>}, {pipeline_mode = #tpu.pipeline_mode<synchronous>, transform_indices = @transform_4, window_bounds = array<i64: 1, 128>}, {pipeline_mode = #tpu.pipeline_mode<synchronous>, transform_indices = @transform_5, window_bounds = array<i64: 128, 128>}, {pipeline_mode = #tpu.pipeline_mode<synchronous>, transform_indices = @transform_6, window_bounds = array<i64: 1, 128>}, {transform_indices = @transform_7, window_bounds = array<i64: 8, 128>}]} {
    %c0 = arith.constant 0 : index
    %c0_0 = arith.constant 0 : index
    %0 = vector.load %arg1[%c0, %c0_0] : memref<8x128xf32, #tpu.memory_space<vmem>>, vector<8x128xf32>
    %1 = arith.truncf %0 : vector<8x128xf32> to vector<8x128xbf16>
    %c0_1 = arith.constant 0 : index
    %c0_2 = arith.constant 0 : index
    %2 = vector.load %arg2[%c0_1, %c0_2] : memref<128x128xbf16, #tpu.memory_space<vmem>>, vector<128x128xbf16>
    %c0_3 = arith.constant 0 : index
    %c0_4 = arith.constant 0 : index
    %3 = vector.load %arg3[%c0_3, %c0_4] : memref<1x128xf32, #tpu.memory_space<vmem>>, vector<1x128xf32>
    %cst = arith.constant dense<0.000000e+00> : vector<8x128xf32>
    %4 = tpu.matmul %1, %2, %cst {dimension_numbers = #tpu.dot_dimension_numbers<[1], [0], [0], [1], [0, 0, 1, 1], [], []>} : vector<8x128xbf16>, vector<128x128xbf16>, vector<8x128xf32> -> vector<8x128xf32>
    %5 = vector.broadcast %3 : vector<1x128xf32> to vector<8x128xf32>
    %6 = arith.addf %4, %5 : vector<8x128xf32>
    %cst_5 = arith.constant 0.000000e+00 : f32
    %7 = vector.broadcast %cst_5 : f32 to vector<8x128xf32>
    %8 = arith.maximumf %6, %7 : vector<8x128xf32>
    %9 = arith.truncf %8 : vector<8x128xf32> to vector<8x128xbf16>
    %c0_6 = arith.constant 0 : index
    %c0_7 = arith.constant 0 : index
    %10 = vector.load %arg4[%c0_6, %c0_7] : memref<128x128xbf16, #tpu.memory_space<vmem>>, vector<128x128xbf16>
    %c0_8 = arith.constant 0 : index
    %c0_9 = arith.constant 0 : index
    %11 = vector.load %arg5[%c0_8, %c0_9] : memref<1x128xf32, #tpu.memory_space<vmem>>, vector<1x128xf32>
    %cst_10 = arith.constant dense<0.000000e+00> : vector<8x128xf32>
    %12 = tpu.matmul %9, %10, %cst_10 {dimension_numbers = #tpu.dot_dimension_numbers<[1], [0], [0], [1], [0, 0, 1, 1], [], []>} : vector<8x128xbf16>, vector<128x128xbf16>, vector<8x128xf32> -> vector<8x128xf32>
    %13 = vector.broadcast %11 : vector<1x128xf32> to vector<8x128xf32>
    %14 = arith.addf %12, %13 : vector<8x128xf32>
    %cst_11 = arith.constant 0.000000e+00 : f32
    %15 = vector.broadcast %cst_11 : f32 to vector<8x128xf32>
    %16 = arith.maximumf %14, %15 : vector<8x128xf32>
    %17 = arith.truncf %16 : vector<8x128xf32> to vector<8x128xbf16>
    %c0_12 = arith.constant 0 : index
    %c0_13 = arith.constant 0 : index
    %18 = vector.load %arg6[%c0_12, %c0_13] : memref<128x128xbf16, #tpu.memory_space<vmem>>, vector<128x128xbf16>
    %c0_14 = arith.constant 0 : index
    %c0_15 = arith.constant 0 : index
    %19 = vector.load %arg7[%c0_14, %c0_15] : memref<1x128xf32, #tpu.memory_space<vmem>>, vector<1x128xf32>
    %cst_16 = arith.constant dense<0.000000e+00> : vector<8x128xf32>
    %20 = tpu.matmul %17, %18, %cst_16 {dimension_numbers = #tpu.dot_dimension_numbers<[1], [0], [0], [1], [0, 0, 1, 1], [], []>} : vector<8x128xbf16>, vector<128x128xbf16>, vector<8x128xf32> -> vector<8x128xf32>
    %21 = vector.broadcast %19 : vector<1x128xf32> to vector<8x128xf32>
    %22 = arith.addf %20, %21 : vector<8x128xf32>
    %23 = math.tanh %22 : vector<8x128xf32>
    %c0_17 = arith.constant 0 : index
    %c0_18 = arith.constant 0 : index
    %24 = vector.load %arg8[%c0_17, %c0_18] : memref<8x128xf32, #tpu.memory_space<vmem>>, vector<8x128xf32>
    tpu.vector_store %arg8[%c0_17, %c0_18], %23 {strides = array<i32>} : memref<8x128xf32, #tpu.memory_space<vmem>>, vector<8x128xf32>,
    return
  }
  func.func @transform_0(%arg0: i32) -> (i32, i32) {
    %c0_i32 = arith.constant 0 : i32
    %c0_i32_0 = arith.constant 0 : i32
    return %arg0, %c0_i32 : i32, i32
  }
  func.func @transform_1(%arg0: i32) -> (i32, i32) {
    %c0_i32 = arith.constant 0 : i32
    %c0_i32_0 = arith.constant 0 : i32
    %c0_i32_1 = arith.constant 0 : i32
    return %c0_i32, %c0_i32_0 : i32, i32
  }
  func.func @transform_2(%arg0: i32) -> (i32, i32) {
    %c0_i32 = arith.constant 0 : i32
    %c0_i32_0 = arith.constant 0 : i32
    %c0_i32_1 = arith.constant 0 : i32
    return %c0_i32, %c0_i32_0 : i32, i32
  }
  func.func @transform_3(%arg0: i32) -> (i32, i32) {
    %c0_i32 = arith.constant 0 : i32
    %c0_i32_0 = arith.constant 0 : i32
    %c0_i32_1 = arith.constant 0 : i32
    return %c0_i32, %c0_i32_0 : i32, i32
  }
  func.func @transform_4(%arg0: i32) -> (i32, i32) {
    %c0_i32 = arith.constant 0 : i32
    %c0_i32_0 = arith.constant 0 : i32
    %c0_i32_1 = arith.constant 0 : i32
    return %c0_i32, %c0_i32_0 : i32, i32
  }
  func.func @transform_5(%arg0: i32) -> (i32, i32) {
    %c0_i32 = arith.constant 0 : i32
    %c0_i32_0 = arith.constant 0 : i32
    %c0_i32_1 = arith.constant 0 : i32
    return %c0_i32, %c0_i32_0 : i32, i32
  }
  func.func @transform_6(%arg0: i32) -> (i32, i32) {
    %c0_i32 = arith.constant 0 : i32
    %c0_i32_0 = arith.constant 0 : i32
    %c0_i32_1 = arith.constant 0 : i32
    return %c0_i32, %c0_i32_0 : i32, i32
  }
  func.func @transform_7(%arg0: i32) -> (i32, i32) {
    %c0_i32 = arith.constant 0 : i32
    %c0_i32_0 = arith.constant 0 : i32
    return %arg0, %c0_i32 : i32, i32
  }
}

</mosaic_0001>

<bundles_post_ra>
// kernel: generator_forward.1
= control target key start
LH: loop header
LB: loop body
LE: loop exit
PB: predicated region body
PF: predicated region fallthrough
CT: control target
= control target key end

     0   :  { %s533_s1 = inlined_call_operand.vmem [shape: bf16[128,128], index: 1, kind: input, shape index: {}]   ;;  %s534_s3 = inlined_call_operand.vmem [shape: bf16[128,128], index: 3, kind: input, shape index: {}]   ;;  %s535_s2 = inlined_call_operand.vmem [shape: f32[1,128], index: 2, kind: input, shape index: {}]   ;;  %s536_s0 = inlined_call_operand.vmem [shape: f32[8,128], index: 0, kind: input, shape index: {}]   ;;  %s537_s4 = inlined_call_operand.vmem [shape: f32[1,128], index: 4, kind: input, shape index: {}]   ;;  %s538_s5 = inlined_call_operand.vmem [shape: bf16[128,128], index: 5, kind: input, shape index: {}]   ;;  %s539_s6 = inlined_call_operand.vmem [shape: f32[1,128], index: 6, kind: input, shape index: {}]   ;;  %s540_s7 = inlined_call_operand.vmem [shape: f32[8,128], index: 7, kind: output, shape index: {}]  }
   0x1   :  { %v384_v0 = vld [vmem:[%s533_s1 + $0x38] sm:$0xff]  ;;  %v383_v1 = vld [vmem:[%s533_s1 + $0x30] sm:$0xff]  ;;  %v382_v4 = vld [vmem:[%s533_s1 + $0x28] sm:$0xff] }
   0x2   :  { %96 = vmatpush.bf16.msra.mxu0 %v384_v0  ;;  %v392_v2 = vld [vmem:[%s534_s3 + $0x38] sm:$0xff]  ;;  %v391_v3 = vld [vmem:[%s534_s3 + $0x30] sm:$0xff]  ;;  %v390_v5 = vld [vmem:[%s534_s3 + $0x28] sm:$0xff] }
   0x3   :  { %179 = vmatpush.bf16.msra.mxu1 %v392_v2  ;;  %v381_v6 = vld [vmem:[%s533_s1 + $0x20] sm:$0xff]  ;;  %v380_v8 = vld [vmem:[%s533_s1 + $0x18] sm:$0xff]  ;;  %v379_v10 = vld [vmem:[%s533_s1 + $0x10] sm:$0xff] }
   0x4   :  { %v389_v7 = vld [vmem:[%s534_s3 + $0x20] sm:$0xff]  ;;  %v388_v9 = vld [vmem:[%s534_s3 + $0x18] sm:$0xff]  ;;  %v387_v11 = vld [vmem:[%s534_s3 + $0x10] sm:$0xff] }
   0x5   :  { %v378_v12 = vld [vmem:[%s533_s1 + $0x8] sm:$0xff]  ;;  %v377_v13 = vld [vmem:[%s533_s1] sm:$0xff]  ;;  %v400_v18 = vld [vmem:[%s538_s5 + $0x38] sm:$0xff] }
   0x6   :  { %97 = vmatpush.bf16.msra.mxu0 %v383_v1  ;;  %v26_v14 = vld [vmem:[%s536_s0] sm:$0xff]  ;;  %v386_v16 = vld [vmem:[%s534_s3 + $0x8] sm:$0xff]  ;;  %262 = vmatpush.bf16.msra.mxu2 %v400_v18  ;;  %v399_v19 = vld [vmem:[%s538_s5 + $0x30] sm:$0xff] }
   0x7   :  { %180 = vmatpush.bf16.msra.mxu1 %v391_v3  ;;  %v27_v15 = vpack.c.bf16 %v26_v14, %v26_v14  ;;  %v385_v17 = vld [vmem:[%s534_s3] sm:$0xff]  ;;  %v398_v20 = vld [vmem:[%s538_s5 + $0x28] sm:$0xff]  ;;  %v396_v22 = vld [vmem:[%s538_s5 + $0x18] sm:$0xff] }
   0x8   :  { %v397_v21 = vld [vmem:[%s538_s5 + $0x20] sm:$0xff]  ;;  %v395_v23 = vld [vmem:[%s538_s5 + $0x10] sm:$0xff]  ;;  %v394_v30 = vld [vmem:[%s538_s5 + $0x8] sm:$0xff] }
   0x9   :  { %v401_v24 = vld [vmem:[%s535_s2] ss:$0 sm:$0xff] }
   0xa   :  { %98 = vmatpush.bf16.msra.mxu0 %v382_v4  ;;  %263 = vmatpush.bf16.msra.mxu2 %v399_v19  ;;  %v393_v31 = vld [vmem:[%s538_s5] sm:$0xff] }
   0xb   :  { %181 = vmatpush.bf16.msra.mxu1 %v390_v5  ;;  %v402_v32 = vld [vmem:[%s537_s4] ss:$0 sm:$0xff] }
   0xc   :  { %v403_v38 = vld [vmem:[%s539_s6] ss:$0 sm:$0xff] }
   0xe   :  { %99 = vmatpush.bf16.msra.mxu0 %v381_v6  ;;  %264 = vmatpush.bf16.msra.mxu2 %v398_v20 }
   0xf   :  { %182 = vmatpush.bf16.msra.mxu1 %v389_v7 }
  0x12   :  { %100 = vmatpush.bf16.msra.mxu0 %v380_v8  ;;  %265 = vmatpush.bf16.msra.mxu2 %v397_v21 }
  0x13   :  { %183 = vmatpush.bf16.msra.mxu1 %v388_v9 }
  0x16   :  { %101 = vmatpush.bf16.msra.mxu0 %v379_v10  ;;  %266 = vmatpush.bf16.msra.mxu2 %v396_v22 }
  0x17   :  { %184 = vmatpush.bf16.msra.mxu1 %v387_v11 }
  0x1a   :  { %102 = vmatpush.bf16.msra.mxu0 %v378_v12  ;;  %267 = vmatpush.bf16.msra.mxu2 %v395_v23 }
  0x1b   :  { %185 = vmatpush.bf16.msra.mxu1 %v386_v16 }
  0x1e   :  { %103 = vmatpush.bf16.msra.mxu0 %v377_v13  ;;  %268 = vmatpush.bf16.msra.mxu2 %v394_v30 }
  0x1f   :  { %186 = vmatpush.bf16.msra.mxu1 %v385_v17 }
  0x21   :  { %104 = vmatmul.bf16.vlgmr.msra.gmra.mxu0 %v27_v15 }
  0x22   :  { %269 = vmatpush.bf16.msra.mxu2 %v393_v31 }
  0x9e   :  { %v105_v25 = vpop.f32.mrf.mxu0 }
  0x9f   :  { %v106_v26 = vadd.f32 %v401_v24, %v105_v25 }
  0xa1   :  { %v109_v27 = vmax.f32 %v106_v26, 0.0 }
  0xa3   :  { %v110_v28 = vpack.c.bf16 %v109_v27, %v109_v27 }
  0xa5   :  { %187 = vmatmul.bf16.vlgmr.msra.gmra.mxu1 %v110_v28 }
  0xa6   :  { %v107_v29 = vpop.f32.mrf.mxu0 }
 0x122   :  { %v188_v33 = vpop.f32.mrf.mxu1 }
 0x123   :  { %v189_v34 = vadd.f32 %v402_v32, %v188_v33 }
 0x125   :  { %v192_v35 = vmax.f32 %v189_v34, 0.0 }
 0x127   :  { %v193_v36 = vpack.c.bf16 %v192_v35, %v192_v35 }
 0x129   :  { %270 = vmatmul.bf16.vlgmr.msra.gmra.mxu2 %v193_v36 }
 0x12a   :  { %v190_v37 = vpop.f32.mrf.mxu1 }
 0x1ac   :  { %v271_v39 = vpop.f32.mrf.mxu2 }
 0x1ad   :  { %v272_v40 = vadd.f32 %v403_v38, %v271_v39 }
 0x1af   :  { %404 = vtanh.f32 %v272_v40 }
 0x1b4   :  { %v273_v41 = vpop.f32.mrf.mxu2 }
 0x1b5   :  { %v405_v42 = vpop.eup %404 }
 0x1b6   :  { %276 = vst [vmem:[%s540_s7] sm:$0xff] %v405_v42 }

</bundles_post_ra>
